<compile_context>
chip_gen: v7x
topology: tpu7x:2x2x1
jax: 0.10.0
libtpu: 0.0.40
codegen_flags: <defaults>
</compile_context>

<pallas_src>
import jax
import jax.numpy as jnp
from jax.experimental import pallas as pl
from jax.experimental.pallas import tpu as pltpu


def _round_up(x, m):
    return (x + m - 1) // m * m


def decoder_kernel(x_ref, w1_ref, b1_ref, w2_ref, b2_ref, o_ref):
    # Layer 1: x @ W1 + b1, ReLU.  MXU matmul with f32 accumulation,
    # bias-add / ReLU epilogue in f32 on the VPU.
    h = jnp.dot(x_ref[...], w1_ref[...], preferred_element_type=jnp.float32)
    h = jnp.maximum(h + b1_ref[...], 0.0)          # b1 is (1, H_pad), broadcasts
    # Layer 2: h @ W2 + b2, ReLU.  Cast h to the weight dtype (no-op for f32,
    # bf16 when the bf16 fast path is enabled) and accumulate in f32.
    y = jnp.dot(h.astype(w2_ref.dtype), w2_ref[...],
                preferred_element_type=jnp.float32)
    o_ref[...] = jnp.maximum(y + b2_ref[...], 0.0).astype(o_ref.dtype)


def decoder_forward(x, w1, b1, w2, b2, *, block_batch=256, use_bf16=False):
    """x: (B, K).  w1: (K, H), b1: (H,) or (1, H).  w2: (H, O), b2: (O,) or (1, O)."""
    B, K = x.shape
    H = w1.shape[1]
    O = w2.shape[1]

    LANE = 128
    H_pad = _round_up(H, LANE)            # lane-dense hidden width
    O_pad = _round_up(O, LANE)            # lane-dense output width
    TB = block_batch                      # batch rows per grid step (mult. of 8/128)
    B_pad = _round_up(B, TB)

    b1 = jnp.reshape(b1, (1, H))
    b2 = jnp.reshape(b2, (1, O))

    # Zero-pad: batch rows (sliced off at the end), hidden cols of W1/b1
    # (ReLU(0)=0, and the matching padded rows of W2 are zero), output cols of
    # W2/b2 (sliced off at the end).
    x_p = jnp.pad(x, ((0, B_pad - B), (0, 0)))
    w1_p = jnp.pad(w1, ((0, 0), (0, H_pad - H)))
    b1_p = jnp.pad(b1, ((0, 0), (0, H_pad - H)))
    w2_p = jnp.pad(w2, ((0, H_pad - H), (0, O_pad - O)))
    b2_p = jnp.pad(b2, ((0, 0), (0, O_pad - O)))

    if use_bf16:
        # bf16 matmul operands (v6e/v7x MXU fast path), f32 accumulation and
        # f32 bias/ReLU epilogue.  Loosen numerical tolerances accordingly.
        x_p = x_p.astype(jnp.bfloat16)
        w1_p = w1_p.astype(jnp.bfloat16)
        w2_p = w2_p.astype(jnp.bfloat16)

    grid = (B_pad // TB,)
    itemsize = jnp.dtype(x.dtype).itemsize
    cost = pl.CostEstimate(
        flops=2 * B * (K * H + H * O),
        transcendentals=0,
        bytes_accessed=(x.size + w1.size + b1.size + w2.size + b2.size
                        + B * O) * itemsize,
    )

    out = pl.pallas_call(
        decoder_kernel,
        out_shape=jax.ShapeDtypeStruct((B_pad, O_pad), x.dtype),
        grid_spec=pltpu.PrefetchScalarGridSpec(
            num_scalar_prefetch=0,
            grid=grid,
            in_specs=[
                # x: streamed over batch; last dim = full array dim (K).
                pl.BlockSpec((TB, K), lambda i: (i, 0)),
                # Weights / biases: one full block, VMEM-resident for all steps.
                pl.BlockSpec((K, H_pad), lambda i: (0, 0)),
                pl.BlockSpec((1, H_pad), lambda i: (0, 0)),
                pl.BlockSpec((H_pad, O_pad), lambda i: (0, 0)),
                pl.BlockSpec((1, O_pad), lambda i: (0, 0)),
            ],
            out_specs=pl.BlockSpec((TB, O_pad), lambda i: (i, 0)),
        ),
        compiler_params=pltpu.CompilerParams(
            dimension_semantics=("parallel",),   # shard batch across TCs on v7x
        ),
        cost_estimate=cost,
    )(x_p, w1_p, b1_p, w2_p, b2_p)

    return out[:B, :O]


if __name__ == "__main__":
    # Module config: Decoder(input_dim=16, hidden_dim=32, output_dim=16)
    input_dim, hidden_dim, output_dim = 16, 32, 16
    batch = 8

    key = jax.random.PRNGKey(0)
    kx, kw1, kb1, kw2, kb2 = jax.random.split(key, 5)

    x = jax.random.normal(kx, (batch, input_dim), dtype=jnp.float32)

    # Deterministic parameter init (uniform, PyTorch-Linear-style bounds).
    lim1 = 1.0 / (input_dim ** 0.5)
    w1 = jax.random.uniform(kw1, (input_dim, hidden_dim), jnp.float32, -lim1, lim1)
    b1 = jax.random.uniform(kb1, (1, hidden_dim), jnp.float32, -lim1, lim1)
    lim2 = 1.0 / (hidden_dim ** 0.5)
    w2 = jax.random.uniform(kw2, (hidden_dim, output_dim), jnp.float32, -lim2, lim2)
    b2 = jax.random.uniform(kb2, (1, output_dim), jnp.float32, -lim2, lim2)

    out = decoder_forward(x, w1, b1, w2, b2)
    out = jax.block_until_ready(out)

    # Pure-JAX reference check (f32 path, strict tolerance).
    h_ref = jnp.maximum(x @ w1 + b1, 0.0)
    y_ref = jnp.maximum(h_ref @ w2 + b2, 0.0)
    assert out.shape == (batch, output_dim)
    assert jnp.allclose(out, y_ref, atol=1e-5, rtol=1e-5)

    print("KERNEL_OK")
</pallas_src>

<mosaic_0001>
module attributes {stable_mosaic.version = 11 : i64} {
  func.func @decoder_kernel(%arg0: i32, %arg1: memref<256x16xf32, #tpu.memory_space<vmem>>, %arg2: memref<16x128xf32, #tpu.memory_space<vmem>>, %arg3: memref<1x128xf32, #tpu.memory_space<vmem>>, %arg4: memref<128x128xf32, #tpu.memory_space<vmem>>, %arg5: memref<1x128xf32, #tpu.memory_space<vmem>>, %arg6: memref<256x128xf32, #tpu.memory_space<vmem>>) attributes {dimension_semantics = [#tpu.dimension_semantics<parallel>], iteration_bounds = array<i64: 1>, scalar_prefetch = 0 : i64, scratch_operands = 0 : i64, tpu.core_type = #tpu.core_type<tc>, window_params = [{transform_indices = @transform_0, window_bounds = array<i64: 256, 16>}, {pipeline_mode = #tpu.pipeline_mode<synchronous>, transform_indices = @transform_1, window_bounds = array<i64: 16, 128>}, {pipeline_mode = #tpu.pipeline_mode<synchronous>, transform_indices = @transform_2, window_bounds = array<i64: 1, 128>}, {pipeline_mode = #tpu.pipeline_mode<synchronous>, transform_indices = @transform_3, window_bounds = array<i64: 128, 128>}, {pipeline_mode = #tpu.pipeline_mode<synchronous>, transform_indices = @transform_4, window_bounds = array<i64: 1, 128>}, {transform_indices = @transform_5, window_bounds = array<i64: 256, 128>}]} {
    %c0 = arith.constant 0 : index
    %c0_0 = arith.constant 0 : index
    %0 = vector.load %arg1[%c0, %c0_0] : memref<256x16xf32, #tpu.memory_space<vmem>>, vector<256x16xf32>
    %c0_1 = arith.constant 0 : index
    %c0_2 = arith.constant 0 : index
    %1 = vector.load %arg2[%c0_1, %c0_2] : memref<16x128xf32, #tpu.memory_space<vmem>>, vector<16x128xf32>
    %cst = arith.constant dense<0.000000e+00> : vector<256x128xf32>
    %2 = tpu.matmul %0, %1, %cst {dimension_numbers = #tpu.dot_dimension_numbers<[1], [0], [0], [1], [0, 0, 1, 1], [], []>} : vector<256x16xf32>, vector<16x128xf32>, vector<256x128xf32> -> vector<256x128xf32>
    %c0_3 = arith.constant 0 : index
    %c0_4 = arith.constant 0 : index
    %3 = vector.load %arg3[%c0_3, %c0_4] : memref<1x128xf32, #tpu.memory_space<vmem>>, vector<1x128xf32>
    %4 = vector.broadcast %3 : vector<1x128xf32> to vector<256x128xf32>
    %5 = arith.addf %2, %4 : vector<256x128xf32>
    %cst_5 = arith.constant 0.000000e+00 : f32
    %6 = vector.broadcast %cst_5 : f32 to vector<256x128xf32>
    %7 = arith.maximumf %5, %6 : vector<256x128xf32>
    %c0_6 = arith.constant 0 : index
    %c0_7 = arith.constant 0 : index
    %8 = vector.load %arg4[%c0_6, %c0_7] : memref<128x128xf32, #tpu.memory_space<vmem>>, vector<128x128xf32>
    %cst_8 = arith.constant dense<0.000000e+00> : vector<256x128xf32>
    %9 = tpu.matmul %7, %8, %cst_8 {dimension_numbers = #tpu.dot_dimension_numbers<[1], [0], [0], [1], [0, 0, 1, 1], [], []>} : vector<256x128xf32>, vector<128x128xf32>, vector<256x128xf32> -> vector<256x128xf32>
    %c0_9 = arith.constant 0 : index
    %c0_10 = arith.constant 0 : index
    %10 = vector.load %arg5[%c0_9, %c0_10] : memref<1x128xf32, #tpu.memory_space<vmem>>, vector<1x128xf32>
    %11 = vector.broadcast %10 : vector<1x128xf32> to vector<256x128xf32>
    %12 = arith.addf %9, %11 : vector<256x128xf32>
    %cst_11 = arith.constant 0.000000e+00 : f32
    %13 = vector.broadcast %cst_11 : f32 to vector<256x128xf32>
    %14 = arith.maximumf %12, %13 : vector<256x128xf32>
    %c0_12 = arith.constant 0 : index
    %c0_13 = arith.constant 0 : index
    %15 = vector.load %arg6[%c0_12, %c0_13] : memref<256x128xf32, #tpu.memory_space<vmem>>, vector<256x128xf32>
    tpu.vector_store %arg6[%c0_12, %c0_13], %14 {strides = array<i32>} : memref<256x128xf32, #tpu.memory_space<vmem>>, vector<256x128xf32>,
    return
  }
  func.func @transform_0(%arg0: i32) -> (i32, i32) {
    %c0_i32 = arith.constant 0 : i32
    %c0_i32_0 = arith.constant 0 : i32
    return %arg0, %c0_i32 : i32, i32
  }
  func.func @transform_1(%arg0: i32) -> (i32, i32) {
    %c0_i32 = arith.constant 0 : i32
    %c0_i32_0 = arith.constant 0 : i32
    %c0_i32_1 = arith.constant 0 : i32
    return %c0_i32, %c0_i32_0 : i32, i32
  }
  func.func @transform_2(%arg0: i32) -> (i32, i32) {
    %c0_i32 = arith.constant 0 : i32
    %c0_i32_0 = arith.constant 0 : i32
    %c0_i32_1 = arith.constant 0 : i32
    return %c0_i32, %c0_i32_0 : i32, i32
  }
  func.func @transform_3(%arg0: i32) -> (i32, i32) {
    %c0_i32 = arith.constant 0 : i32
    %c0_i32_0 = arith.constant 0 : i32
    %c0_i32_1 = arith.constant 0 : i32
    return %c0_i32, %c0_i32_0 : i32, i32
  }
  func.func @transform_4(%arg0: i32) -> (i32, i32) {
    %c0_i32 = arith.constant 0 : i32
    %c0_i32_0 = arith.constant 0 : i32
    %c0_i32_1 = arith.constant 0 : i32
    return %c0_i32, %c0_i32_0 : i32, i32
  }
  func.func @transform_5(%arg0: i32) -> (i32, i32) {
    %c0_i32 = arith.constant 0 : i32
    %c0_i32_0 = arith.constant 0 : i32
    return %arg0, %c0_i32 : i32, i32
  }
}

</mosaic_0001>

<bundles_post_ra>
// kernel: tpu_custom_call.1
= control target key start
LH: loop header
LB: loop body
LE: loop exit
PB: predicated region body
PF: predicated region fallthrough
CT: control target
= control target key end

     0   :  { %vm62_vm0 = vcmask 130048   ;;  %s1372_s0 = inlined_call_operand.vmem [shape: f32[256,16], index: 0, kind: input, shape index: {}]   ;;  %s1373_s1 = inlined_call_operand.vmem [shape: f32[16,128], index: 1, kind: input, shape index: {}]   ;;  %s1374_s2 = inlined_call_operand.vmem [shape: f32[1,128], index: 2, kind: input, shape index: {}]   ;;  %s1375_s3 = inlined_call_operand.vmem [shape: f32[128,128], index: 3, kind: input, shape index: {}]   ;;  %s1376_s4 = inlined_call_operand.vmem [shape: f32[1,128], index: 4, kind: input, shape index: {}]   ;;  %s1377_s5 = inlined_call_operand.hbm [shape: f32[256,128], index: 5, kind: output, shape index: {}]  }
   0x1   :  { %v53_v0 = vld [vmem:[%s1373_s1] sm:$0xff]  ;;  %v54_v1 = vld [vmem:[%s1373_s1 + $0x8] sm:$0xff]  ;;  %v23_v5 = vld [vmem:[%s1372_s0 + $0x10] sm:$0xff] }
   0x2   :  { %v21_v2 = vld [vmem:[%s1372_s0] sm:$0xff]  ;;  %v992_v3 = vpack.c.bf16 %v54_v1, %v53_v0  ;;  %v22_v4 = vld [vmem:[%s1372_s0 + $0x8] sm:$0xff]  ;;  %v24_v6 = vld [vmem:[%s1372_s0 + $0x18] sm:$0xff] }
   0x3   :  { %864 = vmatprep.mubr.msk.f32.mxu0 %vm62_vm0, %v21_v2  ;;  %v25_v7 = vld [vmem:[%s1372_s0 + $0x20] sm:$0xff]  ;;  %v417_v9 = vld [vmem:[%s1375_s3 + $0x8] sm:$0xff]  ;;  %v418_v12 = vld [vmem:[%s1375_s3 + $0x10] sm:$0xff] }
   0x4   :  { %993 = vmatprep.subr.bf16.mxu0 %v992_v3  ;;  %v416_v8 = vld [vmem:[%s1375_s3] sm:$0xff]  ;;  %v26_v10 = vld [vmem:[%s1372_s0 + $0x28] sm:$0xff]  ;;  %v419_v13 = vld [vmem:[%s1375_s3 + $0x18] sm:$0xff] }
   0x5   :  { %995 = vmatpush3.bf16.msra.mxu0 %v992_v3  ;;  %v996_v11 = vpack.c.bf16 %v417_v9, %v416_v8  ;;  %v27_v14 = vld [vmem:[%s1372_s0 + $0x30] sm:$0xff]  ;;  %v1000_v15 = vpack.c.bf16 %v419_v13, %v418_v12  ;;  %v420_v16 = vld [vmem:[%s1375_s3 + $0x20] sm:$0xff]  ;;  %v421_v17 = vld [vmem:[%s1375_s3 + $0x28] sm:$0xff] }
   0x6   :  { %v28_v18 = vld [vmem:[%s1372_s0 + $0x38] sm:$0xff] }
   0x7   :  { %997 = vmatprep.subr.bf16.mxu0 %v996_v11  ;;  %1028 = vmatprep.subr.bf16.mxu1 %v996_v11 }
   0x8   :  { %865 = vmatmul.mubr.msk.f32.vlgmr.msra.gmra.mrb[0].mxu0 %vm62_vm0, %v22_v4  ;;  %1036 = vmatpush3.bf16.msra.mxu1 %v996_v11 }
   0x9   :  { %867 = vmatprep.mubr.msk.f32.mxu0 %vm62_vm0, %v23_v5  ;;  %999 = vmatpush3.bf16.msra.mxu0 %v996_v11 }
   0xc   :  { %868 = vmatmul.mubr.msk.f32.gmra.mrb[2].mxu0 %vm62_vm0, %v24_v6 }
   0xd   :  { %870 = vmatprep.mubr.msk.f32.mxu0 %vm62_vm0, %v25_v7 }
  0x10   :  { %871 = vmatmul.mubr.msk.f32.gmra.mrb[4].mxu0 %vm62_vm0, %v26_v10 }
  0x11   :  { %873 = vmatprep.mubr.msk.f32.mxu0 %vm62_vm0, %v27_v14 }
  0x12   :  { %10 = vsyncpa [#allocation3], 0  ;;  %v29_v19 = vld [vmem:[%s1372_s0 + $0x40] sm:$0xff]  ;;  %1001 = vmatprep.subr.bf16.mxu0 %v1000_v15  ;;  %v1004_v20 = vpack.c.bf16 %v421_v17, %v420_v16  ;;  %1029 = vmatprep.subr.bf16.mxu1 %v1000_v15  ;;  %v422_v21 = vld [vmem:[%s1375_s3 + $0x30] sm:$0xff] }
  0x13   :  { %v423_v22 = vld [vmem:[%s1375_s3 + $0x38] sm:$0xff]  ;;  %1037 = vmatpush3.bf16.msra.mxu1 %v1000_v15  ;;  %v30_v23 = vld [vmem:[%s1372_s0 + $0x48] sm:$0xff]  ;;  %1003 = vmatpush3.bf16.msra.mxu0 %v1000_v15  ;;  %v31_v24 = vld [vmem:[%s1372_s0 + $0x50] sm:$0xff] }
  0x14   :  { %874 = vmatmul.mubr.msk.f32.gmra.mrb[6].mxu0 %vm62_vm0, %v28_v18  ;;  %1005 = vmatprep.subr.bf16.mxu0 %v1004_v20  ;;  %v1008_v25 = vpack.c.bf16 %v423_v22, %v422_v21  ;;  %v424_v26 = vld [vmem:[%s1375_s3 + $0x40] sm:$0xff]  ;;  %v425_v27 = vld [vmem:[%s1375_s3 + $0x48] sm:$0xff]  ;;  %v32_v28 = vld [vmem:[%s1372_s0 + $0x58] sm:$0xff] }
  0x15   :  { %876 = vmatprep.mubr.msk.f32.mxu0 %vm62_vm0, %v29_v19  ;;  %1030 = vmatprep.subr.bf16.mxu1 %v1004_v20  ;;  %v33_v29 = vld [vmem:[%s1372_s0 + $0x60] sm:$0xff]  ;;  %v1012_v30 = vpack.c.bf16 %v425_v27, %v424_v26  ;;  %v426_v31 = vld [vmem:[%s1375_s3 + $0x50] sm:$0xff]  ;;  %v427_v32 = vld [vmem:[%s1375_s3 + $0x58] sm:$0xff] }
  0x16   :  { %v34_v33 = vld [vmem:[%s1372_s0 + $0x68] sm:$0xff]  ;;  %v35_v34 = vld [vmem:[%s1372_s0 + $0x70] sm:$0xff]  ;;  %v1016_v35 = vpack.c.bf16 %v427_v32, %v426_v31  ;;  %v428_v36 = vld [vmem:[%s1375_s3 + $0x60] sm:$0xff] }
  0x17   :  { %1038 = vmatpush3.bf16.msra.mxu1 %v1004_v20  ;;  %1007 = vmatpush3.bf16.msra.mxu0 %v1004_v20  ;;  %v429_v37 = vld [vmem:[%s1375_s3 + $0x68] sm:$0xff]  ;;  %v36_v38 = vld [vmem:[%s1372_s0 + $0x78] sm:$0xff]  ;;  %v37_v39 = vld [vmem:[%s1372_s0 + $0x80] sm:$0xff] }
  0x18   :  { %877 = vmatmul.mubr.msk.f32.gmra.mrb[8].mxu0 %vm62_vm0, %v30_v23  ;;  %1009 = vmatprep.subr.bf16.mxu0 %v1008_v25  ;;  %v1020_v40 = vpack.c.bf16 %v429_v37, %v428_v36  ;;  %v38_v41 = vld [vmem:[%s1372_s0 + $0x88] sm:$0xff]  ;;  %v39_v42 = vld [vmem:[%s1372_s0 + $0x90] sm:$0xff]  ;;  %v40_v43 = vld [vmem:[%s1372_s0 + $0x98] sm:$0xff] }
  0x19   :  { %879 = vmatprep.mubr.msk.f32.mxu0 %vm62_vm0, %v31_v24  ;;  %1031 = vmatprep.subr.bf16.mxu1 %v1008_v25  ;;  %v41_v44 = vld [vmem:[%s1372_s0 + $0xa0] sm:$0xff]  ;;  %v42_v45 = vld [vmem:[%s1372_s0 + $0xa8] sm:$0xff]  ;;  %v43_v46 = vld [vmem:[%s1372_s0 + $0xb0] sm:$0xff] }
  0x1a   :  { %v44_v47 = vld [vmem:[%s1372_s0 + $0xb8] sm:$0xff]  ;;  %v45_v48 = vld [vmem:[%s1372_s0 + $0xc0] sm:$0xff]  ;;  %v46_v49 = vld [vmem:[%s1372_s0 + $0xc8] sm:$0xff] }
  0x1b   :  { %1039 = vmatpush3.bf16.msra.mxu1 %v1008_v25  ;;  %1011 = vmatpush3.bf16.msra.mxu0 %v1008_v25  ;;  %v47_v50 = vld [vmem:[%s1372_s0 + $0xd0] sm:$0xff]  ;;  %v48_v51 = vld [vmem:[%s1372_s0 + $0xd8] sm:$0xff]  ;;  %v49_v52 = vld [vmem:[%s1372_s0 + $0xe0] sm:$0xff] }
  0x1c   :  { %880 = vmatmul.mubr.msk.f32.gmra.mrb[10].mxu0 %vm62_vm0, %v32_v28  ;;  %1013 = vmatprep.subr.bf16.mxu0 %v1012_v30  ;;  %v50_v53 = vld [vmem:[%s1372_s0 + $0xe8] sm:$0xff]  ;;  %v51_v54 = vld [vmem:[%s1372_s0 + $0xf0] sm:$0xff]  ;;  %v52_v55 = vld [vmem:[%s1372_s0 + $0xf8] sm:$0xff] }
  0x1d   :  { %882 = vmatprep.mubr.msk.f32.mxu0 %vm62_vm0, %v33_v29  ;;  %1032 = vmatprep.subr.bf16.mxu1 %v1012_v30  ;;  %v430_v56 = vld [vmem:[%s1375_s3 + $0x70] sm:$0xff]  ;;  %v431_v57 = vld [vmem:[%s1375_s3 + $0x78] sm:$0xff]  ;;  %v1289_v59 = vld [vmem:[%s1374_s2] ss:$0 sm:$0xff]  ;;  %s1071_s3 = smov [#allocation2]  }
  0x1e   :  { %v1024_v58 = vpack.c.bf16 %v431_v57, %v430_v56 }
  0x1f   :  { %1040 = vmatpush3.bf16.msra.mxu1 %v1012_v30  ;;  %1015 = vmatpush3.bf16.msra.mxu0 %v1012_v30 }
  0x20   :  { %883 = vmatmul.mubr.msk.f32.gmra.mrb[12].mxu0 %vm62_vm0, %v34_v33  ;;  %1017 = vmatprep.subr.bf16.mxu0 %v1016_v35 }
  0x21   :  { %885 = vmatprep.mubr.msk.f32.mxu0 %vm62_vm0, %v35_v34  ;;  %1033 = vmatprep.subr.bf16.mxu1 %v1016_v35 }
  0x23   :  { %1041 = vmatpush3.bf16.msra.mxu1 %v1016_v35  ;;  %1019 = vmatpush3.bf16.msra.mxu0 %v1016_v35 }
  0x24   :  { %886 = vmatmul.mubr.msk.f32.gmra.mrb[14].mxu0 %vm62_vm0, %v36_v38  ;;  %1021 = vmatprep.subr.bf16.mxu0 %v1020_v40 }
  0x25   :  { %888 = vmatprep.mubr.msk.f32.mxu0 %vm62_vm0, %v37_v39  ;;  %1034 = vmatprep.subr.bf16.mxu1 %v1020_v40 }
  0x27   :  { %1042 = vmatpush3.bf16.msra.mxu1 %v1020_v40  ;;  %1023 = vmatpush3.bf16.msra.mxu0 %v1020_v40 }
  0x28   :  { %889 = vmatmul.mubr.msk.f32.gmra.mrb[16].mxu0 %vm62_vm0, %v38_v41  ;;  %1025 = vmatprep.subr.bf16.mxu0 %v1024_v58 }
  0x29   :  { %891 = vmatprep.mubr.msk.f32.mxu0 %vm62_vm0, %v39_v42  ;;  %1035 = vmatprep.subr.bf16.mxu1 %v1024_v58 }
  0x2b   :  { %1027 = vmatpush3.bf16.msra.mxu0 %v1024_v58  ;;  %1043 = vmatpush3.bf16.msra.mxu1 %v1024_v58 }
  0x2c   :  { %892 = vmatmul.mubr.msk.f32.gmra.mrb[18].mxu0 %vm62_vm0, %v40_v43 }
  0x2d   :  { %894 = vmatprep.mubr.msk.f32.mxu0 %vm62_vm0, %v41_v44 }
  0x30   :  { %895 = vmatmul.mubr.msk.f32.gmra.mrb[20].mxu0 %vm62_vm0, %v42_v45 }
  0x31   :  { %897 = vmatprep.mubr.msk.f32.mxu0 %vm62_vm0, %v43_v46 }
  0x34   :  { %898 = vmatmul.mubr.msk.f32.gmra.mrb[22].mxu0 %vm62_vm0, %v44_v47 }
  0x35   :  { %900 = vmatprep.mubr.msk.f32.mxu0 %vm62_vm0, %v45_v48 }
  0x38   :  { %901 = vmatmul.mubr.msk.f32.gmra.mrb[24].mxu0 %vm62_vm0, %v46_v49 }
  0x39   :  { %903 = vmatprep.mubr.msk.f32.mxu0 %vm62_vm0, %v47_v50 }
  0x3c   :  { %904 = vmatmul.mubr.msk.f32.gmra.mrb[26].mxu0 %vm62_vm0, %v48_v51 }
  0x3d   :  { %906 = vmatprep.mubr.msk.f32.mxu0 %vm62_vm0, %v49_v52 }
  0x40   :  { %907 = vmatmul.mubr.msk.f32.gmra.mrb[28].mxu0 %vm62_vm0, %v50_v53 }
  0x41   :  { %909 = vmatprep.mubr.msk.f32.mxu0 %vm62_vm0, %v51_v54 }
  0x44   :  { %910 = vmatmul.mubr.msk.f32.gmra.mrb[30].mxu0 %vm62_vm0, %v52_v55 }
  0xdb   :  { %v866_v60 = vpop.f32.mrb[0].mxu0 }
  0xdc   :  { %v231_v61 = vadd.f32 %v866_v60, %v1289_v59  ;;  %v225_v62 = vpop.f32.mrb[1].mxu0 }
  0xdd   :  { %v226_v63 = vadd.f32 %v1289_v59, %v225_v62 }
  0xde   :  { %v385_v2 = vmax.f32 %v231_v61, 0.0 }
  0xdf   :  { %v384_v0 = vmax.f32 %v226_v63, 0.0  ;;  %v869_v1 = vpop.f32.mrb[2].mxu0 }
  0xe0   :  { %v241_v3 = vadd.f32 %v869_v1, %v1289_v59  ;;  %v235_v4 = vpop.f32.mrb[3].mxu0 }
  0xe1   :  { %v236_v5 = vadd.f32 %v1289_v59, %v235_v4  ;;  %944 = vmatprep.mubr.f32.mxu0 %v384_v0 }
  0xe2   :  { %945 = vmatmul.mubr.f32.vlgmr.msra.gmra.mrb[32].mxu0 %v385_v2  ;;  %v387_v8 = vmax.f32 %v241_v3, 0.0 }
  0xe3   :  { %v386_v6 = vmax.f32 %v236_v5, 0.0  ;;  %v872_v7 = vpop.f32.mrb[4].mxu0 }
  0xe4   :  { %v251_v9 = vadd.f32 %v872_v7, %v1289_v59  ;;  %v245_v10 = vpop.f32.mrb[5].mxu0 }
  0xe5   :  { %v246_v11 = vadd.f32 %v1289_v59, %v245_v10  ;;  %947 = vmatprep.mubr.f32.mxu0 %v386_v6 }
  0xe6   :  { %948 = vmatmul.mubr.f32.gmra.mrb[34].mxu0 %v387_v8  ;;  %v389_v14 = vmax.f32 %v251_v9, 0.0 }
  0xe7   :  { %v388_v12 = vmax.f32 %v246_v11, 0.0  ;;  %v875_v13 = vpop.f32.mrb[6].mxu0 }
  0xe8   :  { %v261_v15 = vadd.f32 %v875_v13, %v1289_v59  ;;  %v255_v16 = vpop.f32.mrb[7].mxu0 }
  0xe9   :  { %950 = vmatprep.mubr.f32.mxu0 %v388_v12  ;;  %v256_v17 = vadd.f32 %v1289_v59, %v255_v16 }
  0xea   :  { %951 = vmatmul.mubr.f32.gmra.mrb[36].mxu0 %v389_v14  ;;  %v391_v20 = vmax.f32 %v261_v15, 0.0 }
  0xeb   :  { %v878_v18 = vpop.f32.mrb[8].mxu0  ;;  %v390_v19 = vmax.f32 %v256_v17, 0.0 }
  0xec   :  { %v271_v21 = vadd.f32 %v878_v18, %v1289_v59  ;;  %v265_v22 = vpop.f32.mrb[9].mxu0 }
  0xed   :  { %v266_v23 = vadd.f32 %v1289_v59, %v265_v22  ;;  %953 = vmatprep.mubr.f32.mxu1 %v390_v19 }
  0xee   :  { %954 = vmatmul.mubr.f32.vlgmr.msra.gmra.mrb[0].mxu1 %v391_v20  ;;  %v393_v26 = vmax.f32 %v271_v21, 0.0 }
  0xef   :  { %v392_v24 = vmax.f32 %v266_v23, 0.0  ;;  %v881_v25 = vpop.f32.mrb[10].mxu0 }
  0xf0   :  { %v281_v27 = vadd.f32 %v881_v25, %v1289_v59  ;;  %v275_v28 = vpop.f32.mrb[11].mxu0 }
  0xf1   :  { %v276_v29 = vadd.f32 %v1289_v59, %v275_v28  ;;  %956 = vmatprep.mubr.f32.mxu1 %v392_v24 }
  0xf2   :  { %957 = vmatmul.mubr.f32.gmra.mrb[2].mxu1 %v393_v26  ;;  %v395_v32 = vmax.f32 %v281_v27, 0.0 }
  0xf3   :  { %v394_v30 = vmax.f32 %v276_v29, 0.0  ;;  %v884_v31 = vpop.f32.mrb[12].mxu0  ;;  %v1326_v29 = vld [vmem:[%s1376_s4] ss:$0 sm:$0xff]  ;;  %s733_s4 = sshll.u32 %s1071_s3, 4  ;;  %s734_s4 = int_to_ptr.vmem [resolvable:$true] %s733_s4 }
  0xf4   :  { %v291_v33 = vadd.f32 %v884_v31, %v1289_v59  ;;  %v285_v34 = vpop.f32.mrb[13].mxu0  ;;  %s1047_s16 = scalar_lea.vmem %s734_s4, 4096  ;;  %p1052_p1 = scmp.lt.s32.totalorder %s734_s4, %s734_s4 }
  0xf5   :  { %v286_v35 = vadd.f32 %v1289_v59, %v285_v34  ;;  %959 = vmatprep.mubr.f32.mxu1 %v394_v30  ;;  %p1048_p0 = scmp.ne.s32.totalorder %s734_s4, %s1047_s16  ;;  %p1053_p2 = scmp.lt.s32.totalorder %s1047_s16, %s1047_s16 }
  0xf6   :  { %960 = vmatmul.mubr.f32.gmra.mrb[4].mxu1 %v395_v32  ;;  %v397_v38 = vmax.f32 %v291_v33, 0.0 }
  0xf7   :  { %v396_v36 = vmax.f32 %v286_v35, 0.0  ;;  %v887_v37 = vpop.f32.mrb[14].mxu0  ;;  %p1054_p3 = por %p1053_p2, %p1052_p1 }
  0xf8   :  { %v301_v39 = vadd.f32 %v887_v37, %v1289_v59  ;;  %v295_v40 = vpop.f32.mrb[15].mxu0 }
  0xf9   :  { %v296_v41 = vadd.f32 %v1289_v59, %v295_v40  ;;  %962 = vmatprep.mubr.f32.mxu1 %v396_v36  ;;  %p1055_p4 = pnand %p1054_p3, %p1048_p0 }
  0xfa   :  { %963 = vmatmul.mubr.f32.gmra.mrb[6].mxu1 %v397_v38  ;;  %v399_v44 = vmax.f32 %v301_v39, 0.0 }
  0xfb   :  { %v398_v42 = vmax.f32 %v296_v41, 0.0  ;;  %v890_v43 = vpop.f32.mrb[16].mxu0 }
  0xfc   :  { %v311_v45 = vadd.f32 %v890_v43, %v1289_v59  ;;  %v305_v46 = vpop.f32.mrb[17].mxu0 }
  0xfd   :  { %v306_v47 = vadd.f32 %v1289_v59, %v305_v46  ;;  %965 = vmatprep.mubr.f32.mxu1 %v398_v42 }
  0xfe   :  { %966 = vmatmul.mubr.f32.gmra.mrb[8].mxu1 %v399_v44  ;;  %v401_v50 = vmax.f32 %v311_v45, 0.0 }
  0xff   :  { %v400_v48 = vmax.f32 %v306_v47, 0.0  ;;  %v893_v49 = vpop.f32.mrb[18].mxu0 }
 0x100   :  { %v321_v51 = vadd.f32 %v893_v49, %v1289_v59  ;;  %v315_v52 = vpop.f32.mrb[19].mxu0 }
 0x101   :  { %v316_v53 = vadd.f32 %v1289_v59, %v315_v52  ;;  %968 = vmatprep.mubr.f32.mxu1 %v400_v48 }
 0x102   :  { %969 = vmatmul.mubr.f32.gmra.mrb[10].mxu1 %v401_v50  ;;  %v403_v56 = vmax.f32 %v321_v51, 0.0 }
 0x103   :  { %v402_v54 = vmax.f32 %v316_v53, 0.0  ;;  %v896_v55 = vpop.f32.mrb[20].mxu0 }
 0x104   :  { %v331_v57 = vadd.f32 %v896_v55, %v1289_v59  ;;  %v325_v58 = vpop.f32.mrb[21].mxu0 }
 0x105   :  { %v326_v60 = vadd.f32 %v1289_v59, %v325_v58  ;;  %971 = vmatprep.mubr.f32.mxu1 %v402_v54 }
 0x106   :  { %972 = vmatmul.mubr.f32.gmra.mrb[12].mxu1 %v403_v56  ;;  %v405_v63 = vmax.f32 %v331_v57, 0.0 }
 0x107   :  { %v404_v61 = vmax.f32 %v326_v60, 0.0  ;;  %v899_v62 = vpop.f32.mrb[22].mxu0 }
 0x108   :  { %v341_v0 = vadd.f32 %v899_v62, %v1289_v59  ;;  %v335_v1 = vpop.f32.mrb[23].mxu0 }
 0x109   :  { %v336_v2 = vadd.f32 %v1289_v59, %v335_v1  ;;  %974 = vmatprep.mubr.f32.mxu1 %v404_v61 }
 0x10a   :  { %975 = vmatmul.mubr.f32.gmra.mrb[14].mxu1 %v405_v63  ;;  %v407_v5 = vmax.f32 %v341_v0, 0.0 }
 0x10b   :  { %v406_v3 = vmax.f32 %v336_v2, 0.0  ;;  %v902_v4 = vpop.f32.mrb[24].mxu0 }
 0x10c   :  { %v351_v6 = vadd.f32 %v902_v4, %v1289_v59  ;;  %v345_v7 = vpop.f32.mrb[25].mxu0 }
 0x10d   :  { %v346_v8 = vadd.f32 %v1289_v59, %v345_v7  ;;  %977 = vmatprep.mubr.f32.mxu1 %v406_v3 }
 0x10e   :  { %978 = vmatmul.mubr.f32.gmra.mrb[16].mxu1 %v407_v5  ;;  %v409_v11 = vmax.f32 %v351_v6, 0.0 }
 0x10f   :  { %v408_v9 = vmax.f32 %v346_v8, 0.0  ;;  %v905_v10 = vpop.f32.mrb[26].mxu0 }
 0x110   :  { %v361_v12 = vadd.f32 %v905_v10, %v1289_v59  ;;  %v355_v13 = vpop.f32.mrb[27].mxu0 }
 0x111   :  { %v356_v14 = vadd.f32 %v1289_v59, %v355_v13  ;;  %980 = vmatprep.mubr.f32.mxu1 %v408_v9 }
 0x112   :  { %981 = vmatmul.mubr.f32.gmra.mrb[18].mxu1 %v409_v11  ;;  %v411_v17 = vmax.f32 %v361_v12, 0.0 }
 0x113   :  { %v410_v15 = vmax.f32 %v356_v14, 0.0  ;;  %v908_v16 = vpop.f32.mrb[28].mxu0 }
 0x114   :  { %v371_v18 = vadd.f32 %v908_v16, %v1289_v59  ;;  %v365_v19 = vpop.f32.mrb[29].mxu0 }
 0x115   :  { %v366_v20 = vadd.f32 %v1289_v59, %v365_v19  ;;  %983 = vmatprep.mubr.f32.mxu1 %v410_v15 }
 0x116   :  { %984 = vmatmul.mubr.f32.gmra.mrb[20].mxu1 %v411_v17  ;;  %v413_v23 = vmax.f32 %v371_v18, 0.0 }
 0x117   :  { %v412_v21 = vmax.f32 %v366_v20, 0.0  ;;  %v911_v22 = vpop.f32.mrb[30].mxu0 }
 0x118   :  { %v381_v24 = vadd.f32 %v911_v22, %v1289_v59  ;;  %v375_v25 = vpop.f32.mrb[31].mxu0 }
 0x119   :  { %v376_v26 = vadd.f32 %v1289_v59, %v375_v25  ;;  %986 = vmatprep.mubr.f32.mxu1 %v412_v21 }
 0x11a   :  { %987 = vmatmul.mubr.f32.gmra.mrb[22].mxu1 %v413_v23  ;;  %v415_v28 = vmax.f32 %v381_v24, 0.0 }
 0x11b   :  { %v414_v27 = vmax.f32 %v376_v26, 0.0 }
 0x11d   :  { %989 = vmatprep.mubr.f32.mxu1 %v414_v27 }
 0x11e   :  { %990 = vmatmul.mubr.f32.gmra.mrb[24].mxu1 %v415_v28 }
 0x1b5   :  { %v946_v30 = vpop.f32.mrb[32].mxu0 }
 0x1b6   :  { %v511_v31 = vadd.f32 %v946_v30, %v1326_v29  ;;  %v505_v32 = vpop.f32.mrb[33].mxu0 }
 0x1b7   :  { %v506_v33 = vadd.f32 %v1326_v29, %v505_v32 }
 0x1b8   :  { %v665_v34 = vmax.f32 %v511_v31, 0.0 }
 0x1b9   :  { %v664_v35 = vmax.f32 %v506_v33, 0.0  ;;  %v949_v59 = vpop.f32.mrb[34].mxu0 }
 0x1ba   :  { %697 = vst [vmem:[#allocation2 + $0x8] sm:$0xff] %v665_v34  ;;  %v521_v36 = vadd.f32 %v949_v59, %v1326_v29  ;;  %v515_v37 = vpop.f32.mrb[35].mxu0 }
 0x1bb   :  { %696 = vst [vmem:[#allocation2] sm:$0xff] %v664_v35  ;;  %v516_v38 = vadd.f32 %v1326_v29, %v515_v37 }
 0x1bc   :  { %v667_v39 = vmax.f32 %v521_v36, 0.0 }
 0x1bd   :  { %v666_v40 = vmax.f32 %v516_v38, 0.0  ;;  %v952_v41 = vpop.f32.mrb[36].mxu0 }
 0x1be   :  { %699 = vst [vmem:[#allocation2 + $0x18] sm:$0xff] %v667_v39  ;;  %v531_v42 = vadd.f32 %v952_v41, %v1326_v29  ;;  %v525_v43 = vpop.f32.mrb[37].mxu0 }
 0x1bf   :  { %698 = vst [vmem:[#allocation2 + $0x10] sm:$0xff] %v666_v40  ;;  %v526_v44 = vadd.f32 %v1326_v29, %v525_v43 }
 0x1c0   :  { %v669_v45 = vmax.f32 %v531_v42, 0.0 }
 0x1c1   :  { %v668_v46 = vmax.f32 %v526_v44, 0.0  ;;  %v955_v47 = vpop.f32.mrb[0].mxu1 }
 0x1c2   :  { %701 = vst [vmem:[#allocation2 + $0x28] sm:$0xff] %v669_v45  ;;  %v541_v48 = vadd.f32 %v955_v47, %v1326_v29  ;;  %v535_v49 = vpop.f32.mrb[1].mxu1 }
 0x1c3   :  { %700 = vst [vmem:[#allocation2 + $0x20] sm:$0xff] %v668_v46  ;;  %v536_v50 = vadd.f32 %v1326_v29, %v535_v49 }
 0x1c4   :  { %v671_v51 = vmax.f32 %v541_v48, 0.0 }
 0x1c5   :  { %v670_v52 = vmax.f32 %v536_v50, 0.0  ;;  %v958_v53 = vpop.f32.mrb[2].mxu1 }
 0x1c6   :  { %703 = vst [vmem:[#allocation2 + $0x38] sm:$0xff] %v671_v51  ;;  %v551_v54 = vadd.f32 %v958_v53, %v1326_v29  ;;  %v545_v55 = vpop.f32.mrb[3].mxu1 }
 0x1c7   :  { %702 = vst [vmem:[#allocation2 + $0x30] sm:$0xff] %v670_v52  ;;  %v546_v56 = vadd.f32 %v1326_v29, %v545_v55 }
 0x1c8   :  { %v673_v57 = vmax.f32 %v551_v54, 0.0 }
 0x1c9   :  { %v672_v58 = vmax.f32 %v546_v56, 0.0  ;;  %v961_v60 = vpop.f32.mrb[4].mxu1 }
 0x1ca   :  { %705 = vst [vmem:[#allocation2 + $0x48] sm:$0xff] %v673_v57  ;;  %v561_v61 = vadd.f32 %v961_v60, %v1326_v29  ;;  %v555_v62 = vpop.f32.mrb[5].mxu1 }
 0x1cb   :  { %704 = vst [vmem:[#allocation2 + $0x40] sm:$0xff] %v672_v58  ;;  %v556_v63 = vadd.f32 %v1326_v29, %v555_v62 }
 0x1cc   :  { %v675_v0 = vmax.f32 %v561_v61, 0.0 }
 0x1cd   :  { %v674_v1 = vmax.f32 %v556_v63, 0.0  ;;  %v964_v2 = vpop.f32.mrb[6].mxu1 }
 0x1ce   :  { %707 = vst [vmem:[#allocation2 + $0x58] sm:$0xff] %v675_v0  ;;  %v571_v3 = vadd.f32 %v964_v2, %v1326_v29  ;;  %v565_v4 = vpop.f32.mrb[7].mxu1 }
 0x1cf   :  { %706 = vst [vmem:[#allocation2 + $0x50] sm:$0xff] %v674_v1  ;;  %v566_v5 = vadd.f32 %v1326_v29, %v565_v4 }
 0x1d0   :  { %v677_v6 = vmax.f32 %v571_v3, 0.0 }
 0x1d1   :  { %v676_v7 = vmax.f32 %v566_v5, 0.0  ;;  %v967_v8 = vpop.f32.mrb[8].mxu1 }
 0x1d2   :  { %709 = vst [vmem:[#allocation2 + $0x68] sm:$0xff] %v677_v6  ;;  %v581_v9 = vadd.f32 %v967_v8, %v1326_v29  ;;  %v575_v10 = vpop.f32.mrb[9].mxu1 }
 0x1d3   :  { %708 = vst [vmem:[#allocation2 + $0x60] sm:$0xff] %v676_v7  ;;  %v576_v11 = vadd.f32 %v1326_v29, %v575_v10 }
 0x1d4   :  { %v679_v12 = vmax.f32 %v581_v9, 0.0 }
 0x1d5   :  { %v678_v13 = vmax.f32 %v576_v11, 0.0  ;;  %v970_v14 = vpop.f32.mrb[10].mxu1 }
 0x1d6   :  { %711 = vst [vmem:[#allocation2 + $0x78] sm:$0xff] %v679_v12  ;;  %v591_v15 = vadd.f32 %v970_v14, %v1326_v29  ;;  %v585_v16 = vpop.f32.mrb[11].mxu1 }
 0x1d7   :  { %710 = vst [vmem:[#allocation2 + $0x70] sm:$0xff] %v678_v13  ;;  %v586_v17 = vadd.f32 %v1326_v29, %v585_v16 }
 0x1d8   :  { %v681_v18 = vmax.f32 %v591_v15, 0.0 }
 0x1d9   :  { %v680_v19 = vmax.f32 %v586_v17, 0.0  ;;  %v973_v20 = vpop.f32.mrb[12].mxu1 }
 0x1da   :  { %713 = vst [vmem:[#allocation2 + $0x88] sm:$0xff] %v681_v18  ;;  %v601_v21 = vadd.f32 %v973_v20, %v1326_v29  ;;  %v595_v22 = vpop.f32.mrb[13].mxu1 }
 0x1db   :  { %712 = vst [vmem:[#allocation2 + $0x80] sm:$0xff] %v680_v19  ;;  %v596_v23 = vadd.f32 %v1326_v29, %v595_v22 }
 0x1dc   :  { %v683_v24 = vmax.f32 %v601_v21, 0.0 }
 0x1dd   :  { %v682_v25 = vmax.f32 %v596_v23, 0.0  ;;  %v976_v26 = vpop.f32.mrb[14].mxu1 }
 0x1de   :  { %715 = vst [vmem:[#allocation2 + $0x98] sm:$0xff] %v683_v24  ;;  %v611_v27 = vadd.f32 %v976_v26, %v1326_v29  ;;  %v605_v28 = vpop.f32.mrb[15].mxu1 }
 0x1df   :  { %714 = vst [vmem:[#allocation2 + $0x90] sm:$0xff] %v682_v25  ;;  %v606_v30 = vadd.f32 %v1326_v29, %v605_v28 }
 0x1e0   :  { %v685_v31 = vmax.f32 %v611_v27, 0.0 }
 0x1e1   :  { %v684_v32 = vmax.f32 %v606_v30, 0.0  ;;  %v979_v33 = vpop.f32.mrb[16].mxu1 }
 0x1e2   :  { %717 = vst [vmem:[#allocation2 + $0xa8] sm:$0xff] %v685_v31  ;;  %v621_v34 = vadd.f32 %v979_v33, %v1326_v29  ;;  %v615_v35 = vpop.f32.mrb[17].mxu1 }
 0x1e3   :  { %716 = vst [vmem:[#allocation2 + $0xa0] sm:$0xff] %v684_v32  ;;  %v616_v59 = vadd.f32 %v1326_v29, %v615_v35 }
 0x1e4   :  { %v687_v36 = vmax.f32 %v621_v34, 0.0 }
 0x1e5   :  { %v686_v37 = vmax.f32 %v616_v59, 0.0  ;;  %v982_v38 = vpop.f32.mrb[18].mxu1 }
 0x1e6   :  { %719 = vst [vmem:[#allocation2 + $0xb8] sm:$0xff] %v687_v36  ;;  %v631_v39 = vadd.f32 %v982_v38, %v1326_v29  ;;  %v625_v40 = vpop.f32.mrb[19].mxu1 }
 0x1e7   :  { %718 = vst [vmem:[#allocation2 + $0xb0] sm:$0xff] %v686_v37  ;;  %v626_v41 = vadd.f32 %v1326_v29, %v625_v40 }
 0x1e8   :  { %v689_v42 = vmax.f32 %v631_v39, 0.0 }
 0x1e9   :  { %v688_v43 = vmax.f32 %v626_v41, 0.0  ;;  %v985_v44 = vpop.f32.mrb[20].mxu1 }
 0x1ea   :  { %721 = vst [vmem:[#allocation2 + $0xc8] sm:$0xff] %v689_v42  ;;  %v641_v45 = vadd.f32 %v985_v44, %v1326_v29  ;;  %v635_v46 = vpop.f32.mrb[21].mxu1 }
 0x1eb   :  { %720 = vst [vmem:[#allocation2 + $0xc0] sm:$0xff] %v688_v43  ;;  %v636_v47 = vadd.f32 %v1326_v29, %v635_v46 }
 0x1ec   :  { %v691_v48 = vmax.f32 %v641_v45, 0.0 }
 0x1ed   :  { %v690_v49 = vmax.f32 %v636_v47, 0.0  ;;  %v988_v50 = vpop.f32.mrb[22].mxu1 }
 0x1ee   :  { %723 = vst [vmem:[#allocation2 + $0xd8] sm:$0xff] %v691_v48  ;;  %v651_v51 = vadd.f32 %v988_v50, %v1326_v29  ;;  %v645_v52 = vpop.f32.mrb[23].mxu1 }
 0x1ef   :  { %722 = vst [vmem:[#allocation2 + $0xd0] sm:$0xff] %v690_v49  ;;  %v646_v53 = vadd.f32 %v1326_v29, %v645_v52 }
 0x1f0   :  { %v693_v54 = vmax.f32 %v651_v51, 0.0 }
 0x1f1   :  { %v692_v55 = vmax.f32 %v646_v53, 0.0  ;;  %v991_v56 = vpop.f32.mrb[24].mxu1 }
 0x1f2   :  { %725 = vst [vmem:[#allocation2 + $0xe8] sm:$0xff] %v693_v54  ;;  %v661_v57 = vadd.f32 %v991_v56, %v1326_v29  ;;  %v655_v58 = vpop.f32.mrb[25].mxu1 }
 0x1f3   :  { %724 = vst [vmem:[#allocation2 + $0xe0] sm:$0xff] %v692_v55  ;;  %v656_v60 = vadd.f32 %v1326_v29, %v655_v58 }
 0x1f4   :  { %v695_v61 = vmax.f32 %v661_v57, 0.0 }
 0x1f5   :  { %v694_v62 = vmax.f32 %v656_v60, 0.0 }
 0x1f6   :  { %727 = vst [vmem:[#allocation2 + $0xf8] sm:$0xff] %v695_v61 }
 0x1f7   :  { %726 = vst [vmem:[#allocation2 + $0xf0] sm:$0xff] %v694_v62 }
 0x1f8   :  { %1058 = shalt.err (!%p1055_p4)
}
 0x1f9   :  { %s1059_s19 = scalar_lea.hbm %s1377_s5, 4096 }
 0x1fa   :  { %p1060_p5 = scmp.ne.s32.totalorder %s1377_s5, %s1059_s19  ;;  %p1063_p6 = scmp.lt.u32.totalorder %s1059_s19, %s1377_s5 }
 0x1fc   :  { %p1065_p7 = pnand %p1063_p6, %p1060_p5 }
 0x1fe   :  { %1068 = shalt.err (!%p1065_p7)
}
 0x1ff   :  { %s1072_s24 = smov 128   ;;  %s1073_s25 = smov 8  }
 0x200   :  { %739 = dma.vmem_to_hbm [thread:$0]  %s734_s4, 4096, %s1377_s5, [#allocation3], %s1072_s24, %s1072_s24, %s1073_s25  }
 0x201   :  { %1069 = dma.done.wait [#allocation3], 4096  }
 0x202   :  { %1070 = vsyncadd [#allocation3], 4294963200 }
 0x203   :  { %743 = vsyncpa [#allocation3], 1 }

</bundles_post_ra>
